<compile_context>
chip_gen: v7x
topology: tpu7x:2x2x1
jax: 0.10.0
libtpu: 0.0.40
codegen_flags: <defaults>
</compile_context>

<pallas_src>
import jax
import jax.numpy as jnp
from jax.experimental import pallas as pl
from jax.experimental.pallas import tpu as pltpu

NUM_CLASSES = 3
W0, W1, W2 = 1.0, 2.0, 4.0   # CrossEntropyLoss class weights, compile-time constants
_LANES = 128
_TR_MAX = 1024               # rows per grid step  -> up to 131072 samples / step / core
_NUM_CORES = 2               # leading "parallel" axis; 2 TCs on v7x, serialised on v5e/v6e


def weighted_ce_kernel(logits_ref, targets_ref, nll_ref, w_ref):
    # logits_ref : (3, TR, 128) source dtype (cast to f32 in-kernel)
    # targets_ref: (TR, 128)    int32, padded lanes hold -1
    # nll_ref    : (TR, 128)    f32, per-core resident output accumulator
    # w_ref      : (TR, 128)    f32, per-core resident output accumulator
    step = pl.program_id(1)

    @pl.when(step == 0)
    def _():
        nll_ref[...] = jnp.zeros_like(nll_ref)
        w_ref[...] = jnp.zeros_like(w_ref)

    x0 = logits_ref[0].astype(jnp.float32)      # (TR, 128) dense vregs, no relayout
    x1 = logits_ref[1].astype(jnp.float32)
    x2 = logits_ref[2].astype(jnp.float32)
    t = targets_ref[...]                        # (TR, 128) int32

    # unrolled, numerically stable log-softmax over C=3 (pure VPU + EUP, no XLU reductions)
    m = jnp.maximum(x0, jnp.maximum(x1, x2))
    s0 = x0 - m
    s1 = x1 - m
    s2 = x2 - m
    lse = jnp.log(jnp.exp(s0) + jnp.exp(s1) + jnp.exp(s2))

    # select target-class shifted logit via a where-chain (no one-hot / iota temporaries)
    picked_lp = jnp.where(t == 0, s0, jnp.where(t == 1, s1, s2)) - lse

    # per-sample weight; padded / out-of-range targets (t == -1) get weight 0
    w = jnp.where(t == 0, W0,
        jnp.where(t == 1, W1,
        jnp.where(t == 2, W2, 0.0)))

    nll_ref[...] += w * (-picked_lp)
    w_ref[...] += w


def my_loss(y_pred, y_true):
    """Pallas equivalent of MyLoss.forward. Returns {'loss': scalar f32}."""
    n, c = y_pred.shape
    assert c == NUM_CLASSES

    # Lane/sublane-dense layout: classes lead, batch folded into (rows, 128) lanes.
    logits_t = y_pred.T                                 # (C, N), keep source dtype
    targets = y_true.astype(jnp.int32)                  # (N,)

    rows_raw = pl.cdiv(n, _LANES)
    rows_per_core = pl.cdiv(rows_raw, _NUM_CORES)
    tr = min(_TR_MAX, pl.cdiv(rows_per_core, 8) * 8)    # rows per step, multiple of 8
    steps = pl.cdiv(rows_raw, _NUM_CORES * tr)
    rows_total = _NUM_CORES * steps * tr
    n_padded = rows_total * _LANES

    pad = n_padded - n
    if pad > 0:
        logits_t = jnp.pad(logits_t, ((0, 0), (0, pad)))
        targets = jnp.pad(targets, (0, pad), constant_values=-1)

    logits_r = logits_t.reshape(NUM_CLASSES, rows_total, _LANES)
    targets_r = targets.reshape(rows_total, _LANES)

    nll_out, w_out = pl.pallas_call(
        weighted_ce_kernel,
        out_shape=(
            jax.ShapeDtypeStruct((_NUM_CORES, tr, _LANES), jnp.float32),
            jax.ShapeDtypeStruct((_NUM_CORES, tr, _LANES), jnp.float32),
        ),
        grid_spec=pltpu.PrefetchScalarGridSpec(
            num_scalar_prefetch=0,
            grid=(_NUM_CORES, steps),
            in_specs=[
                pl.BlockSpec((NUM_CLASSES, tr, _LANES),
                             lambda p, i: (0, p * steps + i, 0)),
                pl.BlockSpec((tr, _LANES),
                             lambda p, i: (p * steps + i, 0)),
            ],
            out_specs=[
                pl.BlockSpec((None, tr, _LANES), lambda p, i: (p, 0, 0)),
                pl.BlockSpec((None, tr, _LANES), lambda p, i: (p, 0, 0)),
            ],
        ),
        compiler_params=pltpu.CompilerParams(
            dimension_semantics=("parallel", "arbitrary"),
            vmem_limit_bytes=32 * 1024 * 1024,
        ),
    )(logits_r, targets_r)

    # tiny final cross-lane reduce + divide (per-core partials), done once in the wrapper
    loss = jnp.sum(nll_out) / jnp.sum(w_out)
    return {"loss": loss}


def _reference_loss(y_pred, y_true):
    # torch.nn.CrossEntropyLoss(weight=[1,2,4]) semantics, pure JAX
    log_probs = jax.nn.log_softmax(y_pred.astype(jnp.float32), axis=-1)
    w = jnp.asarray([W0, W1, W2], dtype=jnp.float32)
    picked_lp = jnp.take_along_axis(log_probs, y_true[:, None], axis=1)[:, 0]
    picked_w = w[y_true]
    return -jnp.sum(picked_w * picked_lp) / jnp.sum(picked_w)


if __name__ == "__main__":
    key = jax.random.PRNGKey(0)

    for batch in (8, 300):   # 300 exercises the non-multiple-of-128 padding path
        k_logits, k_targets = jax.random.split(jax.random.fold_in(key, batch))
        y_pred = jax.random.normal(k_logits, (batch, NUM_CLASSES), dtype=jnp.float32)
        y_true = jax.random.randint(k_targets, (batch,), 0, NUM_CLASSES, dtype=jnp.int32)

        result = my_loss(y_pred, y_true)
        loss = jax.block_until_ready(result["loss"])

        ref = _reference_loss(y_pred, y_true)
        assert jnp.allclose(loss, ref, rtol=1e-5, atol=1e-5), (batch, loss, ref)

    print("KERNEL_OK")
</pallas_src>

<mosaic_0001>
module attributes {stable_mosaic.version = 11 : i64} {
  func.func @weighted_ce_kernel(%arg0: i32, %arg1: i32, %arg2: memref<3x8x128xf32, #tpu.memory_space<vmem>>, %arg3: memref<8x128xi32, #tpu.memory_space<vmem>>, %arg4: memref<1x8x128xf32, #tpu.memory_space<vmem>>, %arg5: memref<1x8x128xf32, #tpu.memory_space<vmem>>) attributes {dimension_semantics = [#tpu.dimension_semantics<parallel>, #tpu.dimension_semantics<arbitrary>], iteration_bounds = array<i64: 2, 1>, scalar_prefetch = 0 : i64, scratch_operands = 0 : i64, tpu.core_type = #tpu.core_type<tc>, window_params = [{transform_indices = @transform_0, window_bounds = array<i64: 3, 8, 128>}, {transform_indices = @transform_1, window_bounds = array<i64: 8, 128>}, {transform_indices = @transform_2, window_bounds = array<i64: 1, 8, 128>}, {transform_indices = @transform_3, window_bounds = array<i64: 1, 8, 128>}]} {
    %c0_i32 = arith.constant 0 : i32
    %0 = arith.cmpi eq, %arg1, %c0_i32 : i32
    %1 = arith.extui %0 : i1 to i32
    %c0_i32_0 = arith.constant 0 : i32
    %2 = arith.cmpi ne, %1, %c0_i32_0 : i32
    scf.if %2 {
      %cst_28 = arith.constant 0.000000e+00 : f32
      %56 = vector.broadcast %cst_28 : f32 to vector<8x128xf32>
      %c0_29 = arith.constant 0 : index
      %c0_30 = arith.constant 0 : index
      %c0_31 = arith.constant 0 : index
      %57 = vector.load %arg4[%c0_29, %c0_30, %c0_31] : memref<1x8x128xf32, #tpu.memory_space<vmem>>, vector<1x8x128xf32>
      %58 = vector.shape_cast %57 : vector<1x8x128xf32> to vector<8x128xf32>
      %59 = vector.shape_cast %56 : vector<8x128xf32> to vector<1x8x128xf32>
      tpu.vector_store %arg4[%c0_29, %c0_30, %c0_31], %59 {strides = array<i32>} : memref<1x8x128xf32, #tpu.memory_space<vmem>>, vector<1x8x128xf32>,
      %cst_32 = arith.constant 0.000000e+00 : f32
      %60 = vector.broadcast %cst_32 : f32 to vector<8x128xf32>
      %c0_33 = arith.constant 0 : index
      %c0_34 = arith.constant 0 : index
      %c0_35 = arith.constant 0 : index
      %61 = vector.load %arg5[%c0_33, %c0_34, %c0_35] : memref<1x8x128xf32, #tpu.memory_space<vmem>>, vector<1x8x128xf32>
      %62 = vector.shape_cast %61 : vector<1x8x128xf32> to vector<8x128xf32>
      %63 = vector.shape_cast %60 : vector<8x128xf32> to vector<1x8x128xf32>
      tpu.vector_store %arg5[%c0_33, %c0_34, %c0_35], %63 {strides = array<i32>} : memref<1x8x128xf32, #tpu.memory_space<vmem>>, vector<1x8x128xf32>,
    } else {
    }
    %c0 = arith.constant 0 : index
    %c0_1 = arith.constant 0 : index
    %c0_2 = arith.constant 0 : index
    %3 = vector.load %arg2[%c0, %c0_1, %c0_2] : memref<3x8x128xf32, #tpu.memory_space<vmem>>, vector<1x8x128xf32>
    %4 = vector.shape_cast %3 : vector<1x8x128xf32> to vector<8x128xf32>
    %c1 = arith.constant 1 : index
    %c0_3 = arith.constant 0 : index
    %c0_4 = arith.constant 0 : index
    %5 = vector.load %arg2[%c1, %c0_3, %c0_4] : memref<3x8x128xf32, #tpu.memory_space<vmem>>, vector<1x8x128xf32>
    %6 = vector.shape_cast %5 : vector<1x8x128xf32> to vector<8x128xf32>
    %c2 = arith.constant 2 : index
    %c0_5 = arith.constant 0 : index
    %c0_6 = arith.constant 0 : index
    %7 = vector.load %arg2[%c2, %c0_5, %c0_6] : memref<3x8x128xf32, #tpu.memory_space<vmem>>, vector<1x8x128xf32>
    %8 = vector.shape_cast %7 : vector<1x8x128xf32> to vector<8x128xf32>
    %c0_7 = arith.constant 0 : index
    %c0_8 = arith.constant 0 : index
    %9 = vector.load %arg3[%c0_7, %c0_8] : memref<8x128xi32, #tpu.memory_space<vmem>>, vector<8x128xi32>
    %10 = arith.maximumf %6, %8 : vector<8x128xf32>
    %11 = arith.maximumf %4, %10 : vector<8x128xf32>
    %12 = arith.subf %4, %11 : vector<8x128xf32>
    %13 = arith.subf %6, %11 : vector<8x128xf32>
    %14 = arith.subf %8, %11 : vector<8x128xf32>
    %15 = math.exp %12 : vector<8x128xf32>
    %16 = math.exp %13 : vector<8x128xf32>
    %17 = arith.addf %15, %16 : vector<8x128xf32>
    %18 = math.exp %14 : vector<8x128xf32>
    %19 = arith.addf %17, %18 : vector<8x128xf32>
    %20 = math.log %19 : vector<8x128xf32>
    %c0_i32_9 = arith.constant 0 : i32
    %21 = vector.broadcast %c0_i32_9 : i32 to vector<8x128xi32>
    %22 = arith.cmpi eq, %9, %21 : vector<8x128xi32>
    %c1_i32 = arith.constant 1 : i32
    %23 = vector.broadcast %c1_i32 : i32 to vector<8x128xi32>
    %24 = arith.cmpi eq, %9, %23 : vector<8x128xi32>
    %25 = arith.select %24, %13, %14 : vector<8x128xi1>, vector<8x128xf32>
    %26 = arith.select %22, %12, %25 : vector<8x128xi1>, vector<8x128xf32>
    %27 = arith.subf %26, %20 : vector<8x128xf32>
    %c0_i32_10 = arith.constant 0 : i32
    %28 = vector.broadcast %c0_i32_10 : i32 to vector<8x128xi32>
    %29 = arith.cmpi eq, %9, %28 : vector<8x128xi32>
    %c1_i32_11 = arith.constant 1 : i32
    %30 = vector.broadcast %c1_i32_11 : i32 to vector<8x128xi32>
    %31 = arith.cmpi eq, %9, %30 : vector<8x128xi32>
    %c2_i32 = arith.constant 2 : i32
    %32 = vector.broadcast %c2_i32 : i32 to vector<8x128xi32>
    %33 = arith.cmpi eq, %9, %32 : vector<8x128xi32>
    %cst = arith.constant 4.000000e+00 : f32
    %cst_12 = arith.constant 0.000000e+00 : f32
    %34 = vector.broadcast %cst : f32 to vector<8x128xf32>
    %35 = vector.broadcast %cst_12 : f32 to vector<8x128xf32>
    %36 = arith.select %33, %34, %35 : vector<8x128xi1>, vector<8x128xf32>
    %cst_13 = arith.constant 2.000000e+00 : f32
    %37 = vector.broadcast %cst_13 : f32 to vector<8x128xf32>
    %38 = arith.select %31, %37, %36 : vector<8x128xi1>, vector<8x128xf32>
    %cst_14 = arith.constant 1.000000e+00 : f32
    %39 = vector.broadcast %cst_14 : f32 to vector<8x128xf32>
    %40 = arith.select %29, %39, %38 : vector<8x128xi1>, vector<8x128xf32>
    %c0_15 = arith.constant 0 : index
    %c0_16 = arith.constant 0 : index
    %c0_17 = arith.constant 0 : index
    %41 = vector.load %arg4[%c0_15, %c0_16, %c0_17] : memref<1x8x128xf32, #tpu.memory_space<vmem>>, vector<1x8x128xf32>
    %42 = vector.shape_cast %41 : vector<1x8x128xf32> to vector<8x128xf32>
    %cst_18 = arith.constant 0.000000e+00 : f32
    %43 = vector.broadcast %cst_18 : f32 to vector<8x128xf32>
    %44 = arith.subf %43, %27 : vector<8x128xf32>
    %45 = arith.mulf %40, %44 : vector<8x128xf32>
    %46 = arith.addf %42, %45 : vector<8x128xf32>
    %c0_19 = arith.constant 0 : index
    %c0_20 = arith.constant 0 : index
    %c0_21 = arith.constant 0 : index
    %47 = vector.load %arg4[%c0_19, %c0_20, %c0_21] : memref<1x8x128xf32, #tpu.memory_space<vmem>>, vector<1x8x128xf32>
    %48 = vector.shape_cast %47 : vector<1x8x128xf32> to vector<8x128xf32>
    %49 = vector.shape_cast %46 : vector<8x128xf32> to vector<1x8x128xf32>
    tpu.vector_store %arg4[%c0_19, %c0_20, %c0_21], %49 {strides = array<i32>} : memref<1x8x128xf32, #tpu.memory_space<vmem>>, vector<1x8x128xf32>,
    %c0_22 = arith.constant 0 : index
    %c0_23 = arith.constant 0 : index
    %c0_24 = arith.constant 0 : index
    %50 = vector.load %arg5[%c0_22, %c0_23, %c0_24] : memref<1x8x128xf32, #tpu.memory_space<vmem>>, vector<1x8x128xf32>
    %51 = vector.shape_cast %50 : vector<1x8x128xf32> to vector<8x128xf32>
    %52 = arith.addf %51, %40 : vector<8x128xf32>
    %c0_25 = arith.constant 0 : index
    %c0_26 = arith.constant 0 : index
    %c0_27 = arith.constant 0 : index
    %53 = vector.load %arg5[%c0_25, %c0_26, %c0_27] : memref<1x8x128xf32, #tpu.memory_space<vmem>>, vector<1x8x128xf32>
    %54 = vector.shape_cast %53 : vector<1x8x128xf32> to vector<8x128xf32>
    %55 = vector.shape_cast %52 : vector<8x128xf32> to vector<1x8x128xf32>
    tpu.vector_store %arg5[%c0_25, %c0_26, %c0_27], %55 {strides = array<i32>} : memref<1x8x128xf32, #tpu.memory_space<vmem>>, vector<1x8x128xf32>,
    return
  }
  func.func @transform_0(%arg0: i32, %arg1: i32) -> (i32, i32, i32) {
    %c1_i32 = arith.constant 1 : i32
    %0 = arith.muli %arg0, %c1_i32 : i32
    %1 = arith.addi %0, %arg1 : i32
    %c0_i32 = arith.constant 0 : i32
    %c0_i32_0 = arith.constant 0 : i32
    %c0_i32_1 = arith.constant 0 : i32
    return %c0_i32, %1, %c0_i32_0 : i32, i32, i32
  }
  func.func @transform_1(%arg0: i32, %arg1: i32) -> (i32, i32) {
    %c1_i32 = arith.constant 1 : i32
    %0 = arith.muli %arg0, %c1_i32 : i32
    %1 = arith.addi %0, %arg1 : i32
    %c0_i32 = arith.constant 0 : i32
    %c0_i32_0 = arith.constant 0 : i32
    return %1, %c0_i32 : i32, i32
  }
  func.func @transform_2(%arg0: i32, %arg1: i32) -> (i32, i32, i32) {
    %c0_i32 = arith.constant 0 : i32
    %c0_i32_0 = arith.constant 0 : i32
    %c0_i32_1 = arith.constant 0 : i32
    return %arg0, %c0_i32, %c0_i32_0 : i32, i32, i32
  }
  func.func @transform_3(%arg0: i32, %arg1: i32) -> (i32, i32, i32) {
    %c0_i32 = arith.constant 0 : i32
    %c0_i32_0 = arith.constant 0 : i32
    %c0_i32_1 = arith.constant 0 : i32
    return %arg0, %c0_i32, %c0_i32_0 : i32, i32, i32
  }
}

</mosaic_0001>

<bundles_post_ra>
// kernel: tpu_custom_call.1
= control target key start
LH: loop header
LB: loop body
LE: loop exit
PB: predicated region body
PF: predicated region fallthrough
CT: control target
= control target key end

     0   :  { %9 = vsyncpa [#allocation3], 0  ;;  %s1038_s0 = inlined_call_operand.hbm [shape: f32[3,16,128], index: 0, kind: input, shape index: {}]   ;;  %s1039_s1 = inlined_call_operand.hbm [shape: s32[16,128], index: 1, kind: input, shape index: {}]   ;;  %s1040_s2 = inlined_call_operand.hbm [shape: f32[2,8,128], index: 2, kind: output, shape index: {0}]   ;;  %s1041_s3 = inlined_call_operand.hbm [shape: f32[2,8,128], index: 3, kind: output, shape index: {1}]  }
   0x1   :  { %11 = vsyncpa [#allocation3 + $0x1], 0 }
   0x2   :  { %12 = vsyncpa [#allocation6], 0 }
   0x3   :  { %14 = vsyncpa [#allocation6 + $0x1], 0 }
   0x4   :  { %15 = vsyncpa [#allocation4], 0 }
   0x5   :  { %17 = vsyncpa [#allocation4 + $0x1], 0 }
   0x6   :  { %18 = vsyncpa [#allocation9], 0 }
   0x7   :  { %20 = vsyncpa [#allocation9 + $0x1], 0  ;;  %s780_s12 = smov 0   ;;  %s782_s13 = smov 0  }
   0x8   :  { %s784_s14 = smov 0   ;;  %s786_s15 = smov 0  }
   0x9   :  { %s788_s16 = smov 0   ;;  %s790_s17 = smov 0  }
   0xa LB: > { %s467_s18 = sadd.s32 4294967295, %s750_s17   ;;  %s468_s19 = sadd.s32 4294967294, %s750_s17   ;;  %s750_s17 = sphi %s790_s17, %s26_s17   ;;  %s746_s16 = sphi %s788_s16, %s1059_s16   ;;  %s742_s15 = sphi %s786_s15, %s1058_s15   ;;  %s738_s14 = sphi %s784_s14, %s1057_s14   ;;  %s734_s13 = sphi %s782_s13, %s1056_s13   ;;  %s730_s12 = sphi %s780_s12, %s1055_s12  }
   0xb   : > { %s38_s20 = sadd.s32 1, %s746_s16  ;;  %s47_s21 = sadd.s32 1, %s738_s14 }
   0xc   : > { %p40_p0 = scmp.ge.s32.totalorder %s38_s20, 2  ;;  %p54_p1 = scmp.ne.s32.totalorder %s738_s14, %s734_s13 }
   0xd   : > { %p55_p2 = scmp.eq.s32.totalorder %s750_s17, 0  ;;  %p60_p3 = scmp.ne.s32.totalorder %s734_s13, %s730_s12 }
   0xe   : > { %s1061_s20 = smov (%p40_p0, %s38_s20), 0  ;;  %p61_p5 = scmp.eq.s32.totalorder %s467_s18, 0 }
   0xf   : > { %p821_p4 = por %p55_p2, %p54_p1  ;;  %s44_s23 = ssub.s32 %s746_s16, %s1061_s20 }
  0x10   : > { %p112_p6 = scmp.eq.s32.totalorder %s467_s18, 1  ;;  %p45_p7 = scmp.eq.s32.totalorder %s44_s23, 0 }
  0x11   : > { %p827_p8 = por %p61_p5, %p60_p3  ;;  %p118_p10 = scmp.eq.s32.totalorder %s468_s19, 1 }
  0x12   : > { %p831_p9 = por %p112_p6, %p54_p1  ;;  %p510_p13 = scmp.lt.s32.totalorder %s750_s17, 2 }
  0x13   : > { %s1045_s24 = scalar_select %p827_p8, 1, 0 }
  0x14   : > { %s1046_s25 = scalar_select %p831_p9, 1, 0 }
  0x15   : > { %s836_s26 = scalar_select %p45_p7, %s738_s14, %s47_s21  }
  0x16   : > { %p838_p11 = por %p118_p10, %p60_p3  ;;  %s845_s28 = sand.u32 1, %s738_s14  }
  0x17   : > { %s486_s29 = smul.u32 24, %s845_s28  ;;  %s471_s30 = sshll.u32 %s746_s16, 7 }
  0x18   : > { %s1047_s27 = scalar_select %p838_p11, 1, 0 }
  0x19   : > { %p851_p0 = pnand %p510_p13, %p821_p4  ;;  %s860_s7 = scalar_lea.hbm %s1038_s0, %s471_s30 }
  0x1a   : > { %s168_s8 = scalar_lea.vmem [#allocation2], %s486_s29  ;;  %s165_s10 = scalar_lea.sflag [#allocation3], %s845_s28 }
  0x1b   : > { %s175_s9 = sshll.u32 %s168_s8, 4  ;;  %s572_s11 = scalar_lea.hbm %s860_s7, 384  ;;  %s862_s9 = int_to_ptr.vmem [resolvable:$true] %s175_s9 }
  0x1c   : > { %p573_p1 = scmp.ne.s32.totalorder %s860_s7, %s572_s11  ;;  %p574_p2 = pneg %p851_p0 }
  0x1d   : > { %s577_s21 = scalar_lea.hbm %s1038_s0, 768  ;;  %p578_p5 = scmp.lt.u32.totalorder %s860_s7, %s1038_s0 }
  0x1e   : > { %p575_p3 = pnand %p574_p2, %p573_p1  ;;  %p579_p6 = scmp.lt.u32.totalorder %s577_s21, %s572_s11 }
  0x1f   : > { %p581_p10 = scmp.lt.u32.totalorder %s572_s11, %s860_s7 }
  0x20   : > { %p576_p4 = pneg %p575_p3  ;;  %p580_p7 = por %p579_p6, %p578_p5 }
  0x22   : > { %p582_p13 = por %p581_p10, %p580_p7 }
  0x24   : > { %p583_p12 = pnand %p582_p13, %p576_p4 }
  0x26   : > { %586 = shalt.err (!%p583_p12)
}
  0x27   : > { %s587_s29 = scalar_lea.vmem %s862_s9, 384  ;;  %s752_s5 = smov [#allocation2]  }
  0x28   : > { %p588_p1 = scmp.ne.s32.totalorder %s862_s9, %s587_s29  ;;  %s592_s6 = sshll.u32 %s752_s5, 4  ;;  %s593_s6 = int_to_ptr.vmem [resolvable:$false] %s592_s6 }
  0x29   : > { %s594_s8 = scalar_lea.vmem %s593_s6, 768  ;;  %p595_p9 = scmp.lt.s32.totalorder %s862_s9, %s593_s6 }
  0x2a   : > { %p590_p3 = pnand %p588_p1, %p574_p2  ;;  %p596_p5 = scmp.lt.s32.totalorder %s594_s8, %s587_s29 }
  0x2c   : > { %p591_p11 = pneg %p590_p3  ;;  %p597_p6 = por %p596_p5, %p595_p9 }
  0x2e   : > { %p598_p7 = pnand %p597_p6, %p591_p11 }
  0x30   : > { %601 = shalt.err (!%p598_p7)
}
  0x31   : > { %s753_s11 = smov 256   ;;  %s754_s18 = smov 128  }
  0x32   : > { %s755_s19 = smov 8   ;;  %p474_p12 = scmp.ge.s32.totalorder %s750_s17, 1 }
  0x33   : > { %499 = dma.hbm_to_vmem [thread:$0]  (!%p851_p0), %s860_s7, 384, %s862_s9, %s165_s10, %s753_s11, %s754_s18, %s755_s19  }
  0x34   : > { %p202_p9 = scmp.lt.s32.totalorder %s750_s17, 3  ;;  %s472_s21 = sshll.u32 %s845_s28, 3 }
  0x35   : > { %s904_s5 = scalar_lea.hbm %s1039_s1, %s471_s30  ;;  %s189_s6 = scalar_lea.vmem [#allocation5], %s472_s21 }
  0x36   : > { %p895_p11 = pnand %p474_p12, %p202_p9  ;;  %s197_s8 = sshll.u32 %s189_s6, 4  ;;  %s198_s8 = int_to_ptr.vmem [resolvable:$true] %s197_s8 }
  0x37   : > { %s186_s7 = scalar_lea.sflag [#allocation6], %s845_s28  ;;  %s602_s9 = scalar_lea.hbm %s904_s5, 128 }
  0x38   : > { %s1049_s22 = scalar_select %p895_p11, 1, 0 }
  0x39   : > { %p603_p4 = scmp.ne.s32.totalorder %s904_s5, %s602_s9  ;;  %s607_s18 = scalar_lea.hbm %s1039_s1, 256 }
  0x3a   : > { %p608_p1 = scmp.lt.u32.totalorder %s904_s5, %s1039_s1  ;;  %p609_p3 = scmp.lt.u32.totalorder %s607_s18, %s602_s9 }
  0x3b   : > { %p605_p10 = pnand %p603_p4, %p574_p2  ;;  %p611_p6 = scmp.lt.u32.totalorder %s602_s9, %s904_s5 }
  0x3c   : > { %p610_p5 = por %p609_p3, %p608_p1 }
  0x3d   : > { %p606_p13 = pneg %p605_p10 }
  0x3e   : > { %p612_p7 = por %p611_p6, %p610_p5 }
  0x40   : > { %p613_p12 = pnand %p612_p7, %p606_p13 }
  0x42   : > { %616 = shalt.err (!%p613_p12)
}
  0x43   : > { %s617_s28 = scalar_lea.vmem %s198_s8, 128  ;;  %s756_s21 = smov [#allocation5]  }
  0x44   : > { %p618_p9 = scmp.ne.s32.totalorder %s198_s8, %s617_s28  ;;  %s622_s23 = sshll.u32 %s756_s21, 4  ;;  %s623_s23 = int_to_ptr.vmem [resolvable:$false] %s622_s23 }
  0x45   : > { %s624_s29 = scalar_lea.vmem %s623_s23, 256  ;;  %p625_p8 = scmp.lt.s32.totalorder %s198_s8, %s623_s23 }
  0x46   : > { %p620_p4 = pnand %p618_p9, %p574_p2  ;;  %p626_p11 = scmp.lt.s32.totalorder %s624_s29, %s617_s28 }
  0x48   : > { %p621_p10 = pneg %p620_p4  ;;  %p627_p1 = por %p626_p11, %p625_p8 }
  0x4a   : > { %p628_p3 = pnand %p627_p1, %p621_p10 }
  0x4c   : > { %631 = shalt.err (!%p628_p3)
}
  0x4d   : > { %502 = dma.hbm_to_vmem [thread:$0]  (!%p851_p0), %s904_s5, 128, %s198_s8, %s186_s7  }
  0x4e   : > { %p1050_p13 = scmp.ne.s32.totalorder %s1049_s22, 0 }
  0x4f   : > { %s929_s6 = sand.u32 (!%p1050_p13), 1, %s734_s13   ;;  %p1051_p2 = scmp.ne.s32.totalorder (!%p1050_p13), %s1045_s24, 0 }
  0x50   : > { %206 = sbr.rel (%p1050_p13) target bundleno = 164 (0xa4), region = 28  ;;  %s209_s10 = scalar_lea.sflag (!%p1050_p13), [#allocation3], %s929_s6 }
  0x51   : > { %s487_s9 = smul.u32 (!%p1050_p13), 24, %s929_s6 }
  0x53   : > { %s212_s11 = scalar_lea.vmem (!%p1050_p13), [#allocation2], %s487_s9 }
  0x57   : > { %713 = dma.done.wait (%p1051_p2), %s209_s10, 384  }
  0x58   : > { %715 = vsyncadd (%p1051_p2), %s209_s10, 4294966912  ;;  %s938_s4 = sshll.u32 %s929_s6, 3  ;;  %s218_s22 = scalar_lea.sflag [#allocation6], %s929_s6 }
  0x59   : > { %s221_s5 = scalar_lea.vmem [#allocation5], %s938_s4 }
  0x5a   : > { %717 = dma.done.wait (%p1051_p2), %s218_s22, 128  }
  0x5b   : > { %719 = vsyncadd (%p1051_p2), %s218_s22, 4294967168  ;;  %v262_v0 = vld [vmem:[%s212_s11] sm:$0xff]  ;;  %v478_v1 = vld [vmem:[%s212_s11 + $0x8] sm:$0xff]  ;;  %v757_v6 = vmov 0.0   ;;  %s482_s8 = sshll.u32 %s742_s15, 7  ;;  %s253_s7 = scalar_lea.vmem [#allocation8], %s938_s4 }
  0x5c   : > { %v479_v2 = vld [vmem:[%s212_s11 + $0x10] sm:$0xff]  ;;  %s332_s18 = sshll.u32 %s253_s7, 4  ;;  %s955_s19 = scalar_lea.hbm %s1041_s3, %s482_s8  ;;  %s957_s18 = int_to_ptr.vmem [resolvable:$true] %s332_s18 }
  0x5d   : > { %v267_v3 = vld [vmem:[%s221_s5] sm:$0xff]  ;;  %v268_v4 = vmax.f32 %v478_v1, %v479_v2  ;;  %s306_s28 = scalar_lea.sflag [#allocation9], %s929_s6  ;;  %s632_s21 = scalar_lea.vmem %s957_s18, 128 }
  0x5e   : > { %vm288_vm0 = vcmp.eq.s32.totalorder %v267_v3, 2  ;;  %vm284_vm1 = vcmp.eq.s32.totalorder %v267_v3, 1  ;;  %vm283_vm2 = vcmp.eq.s32.totalorder %v267_v3, 0  ;;  %p633_p8 = scmp.ne.s32.totalorder %s957_s18, %s632_s21  ;;  %p1052_p0 = scmp.ne.s32.totalorder %s1046_s25, 0 }
  0x5f   : > { %v269_v5 = vmax.f32 %v262_v0, %v268_v4  ;;  %v289_v7 = vsel %vm288_vm0, 4.0, %v757_v6  ;;  %s758_s23 = smov [#allocation8]  }
  0x60   : > { %v290_v8 = vsel %vm284_vm1, 2.0, %v289_v7  ;;  %p634_p11 = pnand %p633_p8, %p1052_p0  ;;  %s636_s29 = sshll.u32 %s758_s23, 4  ;;  %s637_s29 = int_to_ptr.vmem [resolvable:$false] %s636_s29 }
  0x61   : > { %v270_v9 = vsub.f32 %v262_v0, %v269_v5  ;;  %v271_v10 = vsub.f32 %v478_v1, %v269_v5  ;;  %v272_v11 = vsub.f32 %v479_v2, %v269_v5  ;;  %v291_v12 = vsel %vm283_vm2, 1.0, %v290_v8  ;;  %s638_s9 = scalar_lea.vmem %s637_s29, 256  ;;  %p639_p6 = scmp.lt.s32.totalorder %s957_s18, %s637_s29 }
  0x62   : > { %299 = vst [vmem:[%s253_s7] sm:$0xff] %v291_v12  ;;  %p635_p5 = pneg %p634_p11  ;;  %p640_p7 = scmp.lt.s32.totalorder %s638_s9, %s632_s21 }
  0x63   : > { %v273_v13 = vmul.f32 1.442695, %v270_v9  ;;  %v275_v14 = vmul.f32 1.442695, %v271_v10  ;;  %v278_v15 = vmul.f32 1.442695, %v272_v11 }
  0x64   : > { %p641_p12 = por %p640_p7, %p639_p6 }
  0x65   : > { %564 = vpow2.f32 %v273_v13 }
  0x66   : > { %p642_p9 = pnand %p641_p12, %p635_p5 }
  0x68   : > { %645 = shalt.err (!%p642_p9)
}
  0x69   : > { %s646_s10 = scalar_lea.hbm %s955_s19, 128  ;;  %s650_s5 = scalar_lea.hbm %s1041_s3, 256 }
  0x6a   : > { %p647_p4 = scmp.ne.s32.totalorder %s955_s19, %s646_s10  ;;  %p651_p3 = scmp.lt.u32.totalorder %s955_s19, %s1041_s3 }
  0x6b   : > { %p652_p13 = scmp.lt.u32.totalorder %s650_s5, %s646_s10  ;;  %p654_p8 = scmp.lt.u32.totalorder %s646_s10, %s955_s19 }
  0x6c   : > { %p648_p10 = pnand %p647_p4, %p1052_p0 }
  0x6d   : > { %p653_p2 = por %p652_p13, %p651_p3 }
  0x6e   : > { %p649_p1 = pneg %p648_p10 }
  0x6f   : > { %p655_p11 = por %p654_p8, %p653_p2 }
  0x71   : > { %p656_p5 = pnand %p655_p11, %p649_p1 }
  0x73   : > { %659 = shalt.err (!%p656_p5)
}
  0x74   : > { %493 = dma.vmem_to_hbm [thread:$0]  (%p1052_p0), %s957_s18, 128, %s955_s19, %s306_s28   ;;  %566 = vpow2.f32 %v275_v14  ;;  %v565_v16 = vpop.eup %564  ;;  %v285_v21 = vsel %vm284_vm1, %v271_v10, %v272_v11 }
  0x75   : > { %568 = vpow2.f32 %v278_v15  ;;  %v286_v23 = vsel %vm283_vm2, %v270_v9, %v285_v21  ;;  %s246_s18 = scalar_lea.vmem [#allocation7], %s938_s4  ;;  %s989_s21 = scalar_lea.hbm %s1040_s2, %s482_s8 }
  0x76   : > { %s319_s30 = sshll.u32 %s246_s18, 4  ;;  %s301_s23 = scalar_lea.sflag [#allocation4], %s929_s6  ;;  %s991_s30 = int_to_ptr.vmem [resolvable:$true] %s319_s30 }
  0x77   : > { %s660_s29 = scalar_lea.vmem %s991_s30, 128  ;;  %s759_s4 = smov [#allocation7]  }
  0x78   : > { %p661_p6 = scmp.ne.s32.totalorder %s991_s30, %s660_s29  ;;  %s664_s9 = sshll.u32 %s759_s4, 4  ;;  %s665_s9 = int_to_ptr.vmem [resolvable:$false] %s664_s9 }
  0x79   : > { %s666_s15 = scalar_lea.vmem %s665_s9, 256  ;;  %p667_p9 = scmp.lt.s32.totalorder %s991_s30, %s665_s9 }
  0x7a   : > { %p662_p7 = pnand %p661_p6, %p1052_p0  ;;  %p668_p4 = scmp.lt.s32.totalorder %s666_s15, %s660_s29 }
  0x7c   : > { %p663_p12 = pneg %p662_p7  ;;  %p669_p10 = por %p668_p4, %p667_p9 }
  0x7e   : > { %v567_v17 = vpop.eup %566  ;;  %p670_p1 = pnand %p669_p10, %p663_p12 }
  0x7f   : > { %v569_v18 = vpop.eup %568  ;;  %v277_v19 = vadd.f32 %v567_v17, %v565_v16 }
  0x81   : > { %v280_v20 = vadd.f32 %v569_v18, %v277_v19 }
  0x83   : > { %570 = vlog2.f32 %v280_v20 }
  0x8d   : > { %v571_v22 = vpop.eup %570 }
  0x8e   : > { %v282_v24 = vmul.f32 0.6931472, %v571_v22 }
  0x90   : > { %v287_v25 = vsub.f32 %v286_v23, %v282_v24 }
  0x92   : > { %v293_v26 = vsub.f32 0.0, %v287_v25 }
  0x94   : > { %v294_v27 = vmul.f32 %v293_v26, %v291_v12 }
  0x96   : > { %296 = vst [vmem:[%s246_s18] sm:$0xff] %v294_v27 }
  0x97   : > { %673 = shalt.err (!%p670_p1)
}
  0x98   : > { %s674_s6 = scalar_lea.hbm %s989_s21, 128  ;;  %s678_s11 = scalar_lea.hbm %s1040_s2, 256 }
  0x99   : > { %p675_p3 = scmp.ne.s32.totalorder %s989_s21, %s674_s6  ;;  %p679_p8 = scmp.lt.u32.totalorder %s989_s21, %s1040_s2 }
  0x9a   : > { %p680_p11 = scmp.lt.u32.totalorder %s678_s11, %s674_s6  ;;  %p682_p6 = scmp.lt.u32.totalorder %s674_s6, %s989_s21 }
  0x9b   : > { %p676_p13 = pnand %p675_p3, %p1052_p0 }
  0x9c   : > { %p681_p5 = por %p680_p11, %p679_p8 }
  0x9d   : > { %p677_p2 = pneg %p676_p13 }
  0x9e   : > { %p683_p7 = por %p682_p6, %p681_p5 }
  0xa0   : > { %p684_p12 = pnand %p683_p7, %p677_p2 }
  0xa2   : > { %687 = shalt.err (!%p684_p12)
}
  0xa3   : > { %492 = dma.vmem_to_hbm [thread:$0]  (%p1052_p0), %s991_s30, 128, %s989_s21, %s301_s23  }
  0xa4 PF: > { %s344_s7 = sand.u32 1, %s730_s12   ;;  %p1053_p9 = scmp.ne.s32.totalorder %s1047_s27, 0 }
  0xa5   : > { %p1054_p4 = scmp.ge.s32.totalorder %s750_s17, 2  ;;  %s345_s24 = scalar_lea.sflag [#allocation4], %s344_s7 }
  0xa7   : > { %p504_p10 = pnand %p1054_p4, %p1053_p9 }
  0xa9   : > { %721 = dma.done.wait (!%p504_p10), %s345_s24, 128  }
  0xaa   : > { %723 = vsyncadd (!%p504_p10), %s345_s24, 4294967168  ;;  %s354_s18 = scalar_lea.sflag [#allocation9], %s344_s7 }
  0xab   : > { %725 = dma.done.wait (!%p504_p10), %s354_s18, 128  }
  0xac   : > { %727 = vsyncadd (!%p504_p10), %s354_s18, 4294967168  ;;  %s26_s17 = sadd.s32 1, %s750_s17   ;;  %s1055_s12 = smov %s734_s13 }
  0xad   : > { %p23_p1 = scmp.ge.s32.totalorder %s26_s17, 4   ;;  %s1056_s13 = smov %s738_s14 }
  0xae   : > { %s1057_s14 = smov %s836_s26  ;;  %s1058_s15 = smov %s746_s16 }
  0xaf   : > { %s1059_s16 = smov %s1061_s20  ;;  %25 = sbr.rel (!%p23_p1) target bundleno = 10 (0xa), region = 109 }
  0xb6   :  { %359 = vsyncpa [#allocation3], 1 }
  0xb7   :  { %361 = vsyncpa [#allocation3 + $0x1], 1 }
  0xb8   :  { %362 = vsyncpa [#allocation6], 1 }
  0xb9   :  { %364 = vsyncpa [#allocation6 + $0x1], 1 }
  0xba   :  { %365 = vsyncpa [#allocation4], 1 }
  0xbb   :  { %367 = vsyncpa [#allocation4 + $0x1], 1 }
  0xbc   :  { %368 = vsyncpa [#allocation9], 1 }
  0xbd   :  { %370 = vsyncpa [#allocation9 + $0x1], 1 }

</bundles_post_ra>
